<compile_context>
chip_gen: v5e
topology: v5e:2x2
jax: 0.10.0
libtpu: 0.0.40
codegen_flags: <defaults>
</compile_context>

<pallas_src>
import functools

import jax
import jax.numpy as jnp
from jax.experimental import pallas as pl
from jax.experimental.pallas import tpu as pltpu

_LANE_C = 512            # lane-dense slab width (multiple of 128)
_TILE_R_MAX = 512        # 512*512*4B = 1 MiB per buffer (safe in default scoped VMEM)
_TILE_R_MIN = 64         # 128 KiB floor so per-step overhead stays amortized
_MIN_PALLAS_ELEMS = 65536  # below this, plain fused XLA elementwise is strictly faster


def _linreg_kernel(w_ref, b_ref, x_ref, o_ref):
    # w_ref, b_ref: (1, 1) scalars in SMEM; x_ref / o_ref: (tile_r, C) VMEM
    # tiles of the lane-dense slab.  Pure VPU FMA, unmasked full-width stores.
    o_ref[...] = x_ref[...] * w_ref[0, 0] + b_ref[0, 0]


@functools.partial(jax.jit, static_argnames=("force_pallas",))
def linear_regression_forward(x, weight, bias, *, force_pallas=False):
    """y = x @ weight.T + bias for weight (1,1), bias (1,) — nn.Linear(1, 1)."""
    assert x.ndim == 2 and x.shape[1] == 1, "expected (N, 1) input"
    n = x.shape[0]

    # Module contract is the f32 nn.Linear demo; compute & return float32.
    x = x.astype(jnp.float32)
    w = weight.astype(jnp.float32)
    b = bias.astype(jnp.float32)

    # Tiny-batch fast path: pallas_call/DMA setup dominates for a handful of
    # elements; a fused XLA elementwise op wins there.
    if n < _MIN_PALLAS_ELEMS and not force_pallas:
        return x * w[0, 0] + b[0]

    w_smem = w.reshape(1, 1)
    b_smem = b.reshape(1, 1)

    # --- lane-dense repack: (N, 1) -> (rows, C) slab, C a multiple of 128 ---
    c = _LANE_C
    rows_needed = -(-n // c)                       # ceil(N / C), static python int
    rows = ((rows_needed + 7) // 8) * 8            # pad rows to sublane (8) ONLY
    total_padded = rows * c

    x_flat = x.reshape(-1)
    pad = total_padded - n
    if pad:
        # Small (< 8*C elements) tail pad; allow_input_fusion below lets XLA
        # fuse this pad/reshape into the pallas_call operand.
        x_flat = jnp.pad(x_flat, (0, pad))
    x_slab = x_flat.reshape(rows, c)

    # Adaptive row tile: cap at ~1 MiB/buffer, shrink until the grid has
    # enough steps (~8) for the double-buffer pipeline to reach steady state.
    tile_r = _TILE_R_MAX
    while tile_r > _TILE_R_MIN and pl.cdiv(rows, tile_r) < 8:
        tile_r //= 2
    if rows < tile_r:
        tile_r = rows                              # single tile; rows % 8 == 0

    grid = (pl.cdiv(rows, tile_r),)                # partial last block masked by Pallas

    y_slab = pl.pallas_call(
        _linreg_kernel,
        out_shape=jax.ShapeDtypeStruct((rows, c), jnp.float32),
        grid=grid,
        in_specs=[
            pl.BlockSpec(memory_space=pltpu.MemorySpace.SMEM),   # weight (1,1)
            pl.BlockSpec(memory_space=pltpu.MemorySpace.SMEM),   # bias   (1,1)
            pl.BlockSpec((tile_r, c), lambda i: (i, 0)),         # x slab tile
        ],
        out_specs=pl.BlockSpec((tile_r, c), lambda i: (i, 0)),
        compiler_params=pltpu.CompilerParams(
            # On v7x, pltpu.CORE_PARALLEL here would shard row tiles across
            # the two TensorCores; PARALLEL is safe on all generations.
            dimension_semantics=(pltpu.PARALLEL,),
            allow_input_fusion=[False, False, True],
        ),
    )(w_smem, b_smem, x_slab)

    # Contract: return exactly (N, 1).  With rows padded only to a sublane
    # multiple this slice copies ~N elements (vs ~2N before).
    return y_slab.reshape(-1)[:n].reshape(n, 1)


if __name__ == "__main__":
    key = jax.random.PRNGKey(0)
    k_w, k_b, k_x, k_x2 = jax.random.split(key, 4)

    # nn.Linear(1, 1) parameter shapes: weight (1, 1), bias (1,),
    # init range U(-1, 1) since fan_in = 1.
    weight = jax.random.uniform(k_w, (1, 1), jnp.float32, minval=-1.0, maxval=1.0)
    bias = jax.random.uniform(k_b, (1,), jnp.float32, minval=-1.0, maxval=1.0)

    # Small (N, 1) batch, forced through the Pallas path so the kernel runs.
    x = jax.random.normal(k_x, (8, 1), jnp.float32)
    y = jax.block_until_ready(
        linear_regression_forward(x, weight, bias, force_pallas=True))
    y_ref = x @ weight.T + bias
    assert y.shape == (8, 1)
    assert jnp.allclose(y, y_ref, atol=1e-6), "small-batch mismatch vs reference"

    # Larger batch exercises the ragged tail + multi-step grid with a
    # partial (masked) last block.
    n_big = 200_000
    x_big = jax.random.normal(k_x2, (n_big, 1), jnp.float32)
    y_big = jax.block_until_ready(linear_regression_forward(x_big, weight, bias))
    y_big_ref = x_big @ weight.T + bias
    assert y_big.shape == (n_big, 1)
    assert jnp.allclose(y_big, y_big_ref, atol=1e-6), "large-batch mismatch vs reference"

    print("KERNEL_OK")
</pallas_src>

<mosaic_0001>
module attributes {stable_mosaic.version = 11 : i64} {
  func.func @_linreg_kernel(%arg0: i32, %arg1: memref<1x1xf32, #tpu.memory_space<smem>>, %arg2: memref<1x1xf32, #tpu.memory_space<smem>>, %arg3: memref<8x512xf32, #tpu.memory_space<vmem>>, %arg4: memref<8x512xf32, #tpu.memory_space<vmem>>) attributes {dimension_semantics = [#tpu.dimension_semantics<parallel>], iteration_bounds = array<i64: 1>, scalar_prefetch = 0 : i64, scratch_operands = 0 : i64, tpu.core_type = #tpu.core_type<tc>, window_params = [{transform_indices = @transform_0, window_bounds = array<i64: 1, 1>}, {transform_indices = @transform_1, window_bounds = array<i64: 1, 1>}, {transform_indices = @transform_2, window_bounds = array<i64: 8, 512>}, {transform_indices = @transform_3, window_bounds = array<i64: 8, 512>}]} {
    %c0 = arith.constant 0 : index
    %c0_0 = arith.constant 0 : index
    %0 = vector.load %arg3[%c0, %c0_0] : memref<8x512xf32, #tpu.memory_space<vmem>>, vector<8x512xf32>
    %c0_1 = arith.constant 0 : index
    %c0_2 = arith.constant 0 : index
    %1 = memref.load %arg1[%c0_1, %c0_2] : memref<1x1xf32, #tpu.memory_space<smem>>
    %2 = vector.broadcast %1 : f32 to vector<8x512xf32>
    %3 = arith.mulf %0, %2 : vector<8x512xf32>
    %c0_3 = arith.constant 0 : index
    %c0_4 = arith.constant 0 : index
    %4 = memref.load %arg2[%c0_3, %c0_4] : memref<1x1xf32, #tpu.memory_space<smem>>
    %5 = vector.broadcast %4 : f32 to vector<8x512xf32>
    %6 = arith.addf %3, %5 : vector<8x512xf32>
    %c0_5 = arith.constant 0 : index
    %c0_6 = arith.constant 0 : index
    %7 = vector.load %arg4[%c0_5, %c0_6] : memref<8x512xf32, #tpu.memory_space<vmem>>, vector<8x512xf32>
    tpu.vector_store %arg4[%c0_5, %c0_6], %6 {strides = array<i32>} : memref<8x512xf32, #tpu.memory_space<vmem>>, vector<8x512xf32>,
    return
  }
  func.func @transform_0(%arg0: i32) -> (i32, i32) {
    %c0_i32 = arith.constant 0 : i32
    %c0_i32_0 = arith.constant 0 : i32
    %c0_i32_1 = arith.constant 0 : i32
    return %c0_i32, %c0_i32_0 : i32, i32
  }
  func.func @transform_1(%arg0: i32) -> (i32, i32) {
    %c0_i32 = arith.constant 0 : i32
    %c0_i32_0 = arith.constant 0 : i32
    %c0_i32_1 = arith.constant 0 : i32
    return %c0_i32, %c0_i32_0 : i32, i32
  }
  func.func @transform_2(%arg0: i32) -> (i32, i32) {
    %c0_i32 = arith.constant 0 : i32
    %c0_i32_0 = arith.constant 0 : i32
    return %arg0, %c0_i32 : i32, i32
  }
  func.func @transform_3(%arg0: i32) -> (i32, i32) {
    %c0_i32 = arith.constant 0 : i32
    %c0_i32_0 = arith.constant 0 : i32
    return %arg0, %c0_i32 : i32, i32
  }
}

</mosaic_0001>

<bundles_post_ra>
// kernel: linear_regression_forward.1
= control target key start
LH: loop header
LB: loop body
LE: loop exit
PB: predicated region body
PF: predicated region fallthrough
CT: control target
= control target key end

     0   :  { %s90_s0 = inlined_call_operand.<no memory space> [shape: f32[1,1], index: 0, kind: input, shape index: {}]   ;;  %s91_s1 = inlined_call_operand.<no memory space> [shape: f32[1,1], index: 1, kind: input, shape index: {}]   ;;  %s92_s2 = inlined_call_operand.vmem [shape: f32[8,512], index: 2, kind: input, shape index: {}]   ;;  %s93_s3 = inlined_call_operand.vmem [shape: f32[8,512], index: 3, kind: output, shape index: {}]  }
   0x1   :  { %v16_v0 = vld [vmem:[%s92_s2] sm:$0xff]  ;;  %v21_v1 = vstv %s90_s0  ;;  %v27_v2 = vstv %s91_s1  ;;  %v17_v3 = vld [vmem:[%s92_s2 + $0x8] sm:$0xff] }
   0x2   :  { %v22_v4 = vmul.f32 %v21_v1, %v16_v0  ;;  %v23_v5 = vmul.f32 %v21_v1, %v17_v3  ;;  %v18_v6 = vld [vmem:[%s92_s2 + $0x10] sm:$0xff]  ;;  %v19_v7 = vld [vmem:[%s92_s2 + $0x18] sm:$0xff] }
   0x3   :  { %v24_v8 = vmul.f32 %v21_v1, %v18_v6  ;;  %v25_v9 = vmul.f32 %v21_v1, %v19_v7 }
   0x4   :  { %v28_v10 = vadd.f32 %v27_v2, %v22_v4  ;;  %v29_v11 = vadd.f32 %v27_v2, %v23_v5 }
   0x5   :  { %v30_v12 = vadd.f32 %v27_v2, %v24_v8  ;;  %v31_v13 = vadd.f32 %v27_v2, %v25_v9 }
   0x6   :  { %32 = vst [vmem:[%s93_s3] sm:$0xff] %v28_v10 }
   0x7   :  { %33 = vst [vmem:[%s93_s3 + $0x8] sm:$0xff] %v29_v11 }
   0x8   :  { %34 = vst [vmem:[%s93_s3 + $0x10] sm:$0xff] %v30_v12 }
   0x9   :  { %35 = vst [vmem:[%s93_s3 + $0x18] sm:$0xff] %v31_v13 }

</bundles_post_ra>
